<compile_context>
chip_gen: v7x
topology: tpu7x:2x2x1
jax: 0.10.0
libtpu: 0.0.40
codegen_flags: <defaults>
</compile_context>

<pallas_src>
import functools

import jax
import jax.numpy as jnp
from jax import lax
from jax.experimental import pallas as pl
from jax.experimental.pallas import tpu as pltpu


# ----------------------------------------------------------------------------
# abcd-parametrization bookkeeping (plain Python, mirrors MuLinear.__init__)
# ----------------------------------------------------------------------------
def mu_linear_params(
    in_features: int,
    out_features: int,
    bias: bool,
    layer: str,             # 'input' | 'hidden' | 'output'
    optimizer: str,         # 'sgd' | 'adam' | 'adamw'
    weight_init_std: float = 1.0,
    bias_init_std: float = 0.0,
    lr_scale: float = 1.0,
    base_width: int = 1,
    key: jax.Array | None = None,
):
    """Returns (weight_unscaled, bias_unscaled_or_None, weight_mult, bias_mult)."""
    if layer == "output":
        bias_width = base_width
    else:
        bias_width = out_features
    if layer == "input":
        weight_width = out_features
    else:
        weight_width = in_features

    if optimizer == "sgd":
        bias_a, bias_b = -0.5, 0.5
        if layer == "input":
            weight_a, weight_b = -0.5, 0.5
        elif layer == "hidden":
            weight_a, weight_b = 0.0, 0.5
        elif layer == "output":
            weight_a, weight_b = 0.5, 0.5
        else:
            raise ValueError(layer)
    elif optimizer in ("adam", "adamw"):
        bias_a, bias_b = 0.0, 0.0
        if layer == "input":
            weight_a, weight_b = 0.0, 0.0
        elif layer == "hidden":
            weight_a, weight_b = 1.0, -0.5
        elif layer == "output":
            weight_a, weight_b = 1.0, 0.0
        else:
            raise ValueError(layer)
    else:
        raise ValueError(optimizer)

    if key is None:
        key = jax.random.PRNGKey(0)
    k_w, k_b = jax.random.split(key)

    # weight
    weight_multiplier = (lr_scale ** 0.5) * (base_width / weight_width) ** weight_a
    if weight_init_std == 0:
        weight_unscaled = jnp.zeros((out_features, in_features), jnp.float32)
    else:
        w_std = weight_init_std * (base_width / weight_width) ** weight_b / (lr_scale ** 0.5)
        weight_unscaled = w_std * jax.random.normal(
            k_w, (out_features, in_features), jnp.float32
        )

    # bias
    if bias:
        bias_multiplier = (lr_scale ** 0.5) * (base_width / bias_width) ** bias_a
        if bias_init_std == 0:
            bias_unscaled = jnp.zeros((out_features,), jnp.float32)
        else:
            b_std = bias_init_std * (base_width / bias_width) ** bias_b / (lr_scale ** 0.5)
            bias_unscaled = b_std * jax.random.normal(k_b, (out_features,), jnp.float32)
    else:
        bias_multiplier = 0.0
        bias_unscaled = None

    return weight_unscaled, bias_unscaled, float(weight_multiplier), float(bias_multiplier)


# ----------------------------------------------------------------------------
# Pallas kernels
#   grid = (M/tm, N/tn, K/tk), K axis is the reduction ("arbitrary") axis.
#   acc_ref is a (tm, tn) f32 VMEM accumulator persisting across K steps.
# ----------------------------------------------------------------------------
_CONTRACT_K_BOTH = (((1,), (1,)), ((), ()))   # x:(tm,tk) . w:(tn,tk) -> (tm,tn)


def _mu_linear_kernel_bias(x_ref, w_ref, b_ref, o_ref, acc_ref, *, weight_mult, bias_mult):
    @pl.when(pl.program_id(2) == 0)
    def _():
        acc_ref[...] = jnp.zeros_like(acc_ref)

    acc_ref[...] += lax.dot_general(
        x_ref[...], w_ref[...],
        dimension_numbers=_CONTRACT_K_BOTH,
        preferred_element_type=jnp.float32,
    )

    @pl.when(pl.program_id(2) == pl.num_programs(2) - 1)
    def _():
        out = acc_ref[...] * weight_mult + bias_mult * b_ref[...]   # b_ref: (1, tn)
        o_ref[...] = out.astype(o_ref.dtype)


def _mu_linear_kernel_nobias(x_ref, w_ref, o_ref, acc_ref, *, weight_mult):
    @pl.when(pl.program_id(2) == 0)
    def _():
        acc_ref[...] = jnp.zeros_like(acc_ref)

    acc_ref[...] += lax.dot_general(
        x_ref[...], w_ref[...],
        dimension_numbers=_CONTRACT_K_BOTH,
        preferred_element_type=jnp.float32,
    )

    @pl.when(pl.program_id(2) == pl.num_programs(2) - 1)
    def _():
        o_ref[...] = (acc_ref[...] * weight_mult).astype(o_ref.dtype)


# ----------------------------------------------------------------------------
# Wrapper
# ----------------------------------------------------------------------------
def _round_up(v: int, m: int) -> int:
    return -(-v // m) * m


def mu_linear_forward(
    x, weight_unscaled, bias_unscaled, weight_mult, bias_mult,
    *, tm: int | None = None, tn: int | None = None, tk: int | None = None,
    compute_dtype=None,
):
    """x: (M, K);  weight_unscaled: (N, K);  bias_unscaled: (N,) or None.

    Arbitrary M/N/K are supported (inputs are zero-padded to tile multiples and
    the output is sliced back).  compute_dtype=jnp.bfloat16 casts the matmul
    operands (f32 accumulation + f32 epilogue are kept) for v6e/v7x MXU peak.
    """
    M, K = x.shape
    N, K2 = weight_unscaled.shape
    assert K == K2, (K, K2)
    out_dtype = x.dtype
    has_bias = bias_unscaled is not None

    # ---- tile selection: big MXU-friendly tiles, lane-dense (128) N/K -------
    m_align = 16 if compute_dtype == jnp.bfloat16 else 8   # bf16 sublane packing
    if tm is None:
        tm = 256 if M >= 256 else _round_up(max(M, m_align), m_align)
    if tn is None:
        tn = 256 if N >= 256 else _round_up(N, 128)
    if tk is None:
        tk = 512 if K >= 512 else _round_up(K, 128)

    Mp, Np, Kp = _round_up(M, tm), _round_up(N, tn), _round_up(K, tk)

    # ---- operand prep (optional bf16 cast, zero-padding to tile multiples) --
    x_op = x if compute_dtype is None else x.astype(compute_dtype)
    w_op = weight_unscaled if compute_dtype is None else weight_unscaled.astype(compute_dtype)
    if (Mp, Kp) != (M, K):
        x_op = jnp.pad(x_op, ((0, Mp - M), (0, Kp - K)))
    if (Np, Kp) != (N, K):
        w_op = jnp.pad(w_op, ((0, Np - N), (0, Kp - K)))

    grid = (Mp // tm, Np // tn, Kp // tk)

    in_specs = [
        pl.BlockSpec((tm, tk), lambda i, j, k: (i, k)),   # x tile
        pl.BlockSpec((tn, tk), lambda i, j, k: (j, k)),   # streamed weight tile
        # TODO(synk): consider pipeline_mode=pl.Buffered(3) on the weight spec
        # when Kp//tk is large and VMEM headroom allows (DMA-latency hiding).
    ]
    operands = [x_op, w_op]

    if has_bias:
        b2d = bias_unscaled.astype(jnp.float32).reshape(1, N)
        if Np != N:
            b2d = jnp.pad(b2d, ((0, 0), (0, Np - N)))
        in_specs.append(pl.BlockSpec((1, tn), lambda i, j, k: (0, j)))
        operands.append(b2d)
        kernel = functools.partial(
            _mu_linear_kernel_bias,
            weight_mult=float(weight_mult), bias_mult=float(bias_mult),
        )
    else:
        kernel = functools.partial(
            _mu_linear_kernel_nobias, weight_mult=float(weight_mult),
        )

    # ---- VMEM budget: 2x double-buffered tiles + accumulator, with headroom,
    #      capped well under v7x's 64 MiB/TC physical VMEM ---------------------
    in_elem = jnp.dtype(x_op.dtype).itemsize
    out_elem = jnp.dtype(out_dtype).itemsize
    vmem_bytes = (
        2 * tm * tk * in_elem        # x double buffer
        + 2 * tn * tk * in_elem      # weight double buffer
        + 2 * tm * tn * out_elem     # output double buffer
        + tm * tn * 4                # f32 accumulator scratch
        + 2 * tn * 4                 # bias row
    )
    vmem_limit = min(max(2 * vmem_bytes + (8 << 20), 32 << 20), 48 << 20)

    out_p = pl.pallas_call(
        kernel,
        out_shape=jax.ShapeDtypeStruct((Mp, Np), out_dtype),
        grid_spec=pltpu.PrefetchScalarGridSpec(
            num_scalar_prefetch=0,
            grid=grid,
            in_specs=in_specs,
            out_specs=pl.BlockSpec((tm, tn), lambda i, j, k: (i, j)),
            scratch_shapes=[pltpu.VMEM((tm, tn), jnp.float32)],
        ),
        compiler_params=pltpu.CompilerParams(
            dimension_semantics=("parallel", "parallel", "arbitrary"),
            vmem_limit_bytes=vmem_limit,
        ),
    )(*operands)

    if (Mp, Np) != (M, N):
        out_p = out_p[:M, :N]
    return out_p


# ----------------------------------------------------------------------------
# Demo / correctness check (small shapes)
# ----------------------------------------------------------------------------
if __name__ == "__main__":
    key = jax.random.PRNGKey(0)
    k_param, k_x = jax.random.split(key)

    # ---- case 1: hidden layer, adam, with bias ------------------------------
    batch, in_features, out_features = 16, 32, 64
    w_u, b_u, wm, bm = mu_linear_params(
        in_features=in_features,
        out_features=out_features,
        bias=True,
        layer="hidden",
        optimizer="adam",
        weight_init_std=1.0,
        bias_init_std=0.5,
        lr_scale=2.0,
        base_width=8,
        key=k_param,
    )
    x = jax.random.normal(k_x, (batch, in_features), jnp.float32)

    y = jax.block_until_ready(mu_linear_forward(x, w_u, b_u, wm, bm))
    y_ref = x @ (wm * w_u).T + bm * b_u
    assert y.shape == (batch, out_features)
    assert jnp.allclose(y, y_ref, atol=1e-5, rtol=1e-5), float(jnp.max(jnp.abs(y - y_ref)))

    # ---- case 2: output layer, sgd, no bias, K-tiled reduction path ----------
    batch2, in2, out2 = 24, 256, 48
    w_u2, b_u2, wm2, bm2 = mu_linear_params(
        in_features=in2,
        out_features=out2,
        bias=False,
        layer="output",
        optimizer="sgd",
        weight_init_std=1.0,
        bias_init_std=0.0,
        lr_scale=1.0,
        base_width=8,
        key=jax.random.PRNGKey(3),
    )
    x2 = jax.random.normal(jax.random.PRNGKey(7), (batch2, in2), jnp.float32)

    # tk=128 forces 2 K-tiles -> exercises the accumulator init/finalize path.
    y2 = jax.block_until_ready(mu_linear_forward(x2, w_u2, None, wm2, bm2, tk=128))
    y2_ref = x2 @ (wm2 * w_u2).T
    assert y2.shape == (batch2, out2)
    assert jnp.allclose(y2, y2_ref, atol=1e-5, rtol=1e-5), float(jnp.max(jnp.abs(y2 - y2_ref)))

    print("KERNEL_OK")
</pallas_src>

<mosaic_0001>
module attributes {stable_mosaic.version = 11 : i64} {
  func.func @_mu_linear_kernel_bias(%arg0: i32, %arg1: i32, %arg2: i32, %arg3: memref<16x128xf32, #tpu.memory_space<vmem>>, %arg4: memref<128x128xf32, #tpu.memory_space<vmem>>, %arg5: memref<1x128xf32, #tpu.memory_space<vmem>>, %arg6: memref<16x128xf32, #tpu.memory_space<vmem>>, %arg7: memref<16x128xf32, #tpu.memory_space<vmem>>) attributes {dimension_semantics = [#tpu.dimension_semantics<parallel>, #tpu.dimension_semantics<parallel>, #tpu.dimension_semantics<arbitrary>], iteration_bounds = array<i64: 1, 1, 1>, scalar_prefetch = 0 : i64, scratch_operands = 1 : i64, tpu.core_type = #tpu.core_type<tc>, window_params = [{transform_indices = @transform_0, window_bounds = array<i64: 16, 128>}, {transform_indices = @transform_1, window_bounds = array<i64: 128, 128>}, {transform_indices = @transform_2, window_bounds = array<i64: 1, 128>}, {transform_indices = @transform_3, window_bounds = array<i64: 16, 128>}]} {
    %c0_i32 = arith.constant 0 : i32
    %0 = arith.cmpi eq, %arg2, %c0_i32 : i32
    %1 = arith.extui %0 : i1 to i32
    %c0_i32_0 = arith.constant 0 : i32
    %2 = arith.cmpi ne, %1, %c0_i32_0 : i32
    scf.if %2 {
      %cst_10 = arith.constant 0.000000e+00 : f32
      %12 = vector.broadcast %cst_10 : f32 to vector<16x128xf32>
      %c0_11 = arith.constant 0 : index
      %c0_12 = arith.constant 0 : index
      %13 = vector.load %arg7[%c0_11, %c0_12] : memref<16x128xf32, #tpu.memory_space<vmem>>, vector<16x128xf32>
      tpu.vector_store %arg7[%c0_11, %c0_12], %12 {strides = array<i32>} : memref<16x128xf32, #tpu.memory_space<vmem>>, vector<16x128xf32>,
    } else {
    }
    %c0 = arith.constant 0 : index
    %c0_1 = arith.constant 0 : index
    %3 = vector.load %arg7[%c0, %c0_1] : memref<16x128xf32, #tpu.memory_space<vmem>>, vector<16x128xf32>
    %c0_2 = arith.constant 0 : index
    %c0_3 = arith.constant 0 : index
    %4 = vector.load %arg3[%c0_2, %c0_3] : memref<16x128xf32, #tpu.memory_space<vmem>>, vector<16x128xf32>
    %c0_4 = arith.constant 0 : index
    %c0_5 = arith.constant 0 : index
    %5 = vector.load %arg4[%c0_4, %c0_5] : memref<128x128xf32, #tpu.memory_space<vmem>>, vector<128x128xf32>
    %cst = arith.constant dense<0.000000e+00> : vector<16x128xf32>
    %6 = tpu.matmul %4, %5, %cst {dimension_numbers = #tpu.dot_dimension_numbers<[1], [1], [0], [0], [0, 0, 1, 0], [], []>} : vector<16x128xf32>, vector<128x128xf32>, vector<16x128xf32> -> vector<16x128xf32>
    %7 = arith.addf %3, %6 : vector<16x128xf32>
    %c0_6 = arith.constant 0 : index
    %c0_7 = arith.constant 0 : index
    %8 = vector.load %arg7[%c0_6, %c0_7] : memref<16x128xf32, #tpu.memory_space<vmem>>, vector<16x128xf32>
    tpu.vector_store %arg7[%c0_6, %c0_7], %7 {strides = array<i32>} : memref<16x128xf32, #tpu.memory_space<vmem>>, vector<16x128xf32>,
    %c0_i32_8 = arith.constant 0 : i32
    %9 = arith.cmpi eq, %arg2, %c0_i32_8 : i32
    %10 = arith.extui %9 : i1 to i32
    %c0_i32_9 = arith.constant 0 : i32
    %11 = arith.cmpi ne, %10, %c0_i32_9 : i32
    scf.if %11 {
      %c0_10 = arith.constant 0 : index
      %c0_11 = arith.constant 0 : index
      %12 = vector.load %arg7[%c0_10, %c0_11] : memref<16x128xf32, #tpu.memory_space<vmem>>, vector<16x128xf32>
      %cst_12 = arith.constant 0.353553385 : f32
      %13 = vector.broadcast %cst_12 : f32 to vector<16x128xf32>
      %14 = arith.mulf %12, %13 : vector<16x128xf32>
      %c0_13 = arith.constant 0 : index
      %c0_14 = arith.constant 0 : index
      %15 = vector.load %arg5[%c0_13, %c0_14] : memref<1x128xf32, #tpu.memory_space<vmem>>, vector<1x128xf32>
      %cst_15 = arith.constant 1.41421354 : f32
      %16 = vector.broadcast %cst_15 : f32 to vector<1x128xf32>
      %17 = arith.mulf %16, %15 : vector<1x128xf32>
      %18 = vector.broadcast %17 : vector<1x128xf32> to vector<16x128xf32>
      %19 = arith.addf %14, %18 : vector<16x128xf32>
      %c0_16 = arith.constant 0 : index
      %c0_17 = arith.constant 0 : index
      %20 = vector.load %arg6[%c0_16, %c0_17] : memref<16x128xf32, #tpu.memory_space<vmem>>, vector<16x128xf32>
      tpu.vector_store %arg6[%c0_16, %c0_17], %19 {strides = array<i32>} : memref<16x128xf32, #tpu.memory_space<vmem>>, vector<16x128xf32>,
    } else {
    }
    return
  }
  func.func @transform_0(%arg0: i32, %arg1: i32, %arg2: i32) -> (i32, i32) {
    %c0_i32 = arith.constant 0 : i32
    return %arg0, %arg2 : i32, i32
  }
  func.func @transform_1(%arg0: i32, %arg1: i32, %arg2: i32) -> (i32, i32) {
    %c0_i32 = arith.constant 0 : i32
    return %arg1, %arg2 : i32, i32
  }
  func.func @transform_2(%arg0: i32, %arg1: i32, %arg2: i32) -> (i32, i32) {
    %c0_i32 = arith.constant 0 : i32
    %c0_i32_0 = arith.constant 0 : i32
    return %c0_i32, %arg1 : i32, i32
  }
  func.func @transform_3(%arg0: i32, %arg1: i32, %arg2: i32) -> (i32, i32) {
    %c0_i32 = arith.constant 0 : i32
    return %arg0, %arg1 : i32, i32
  }
}

</mosaic_0001>

<bundles_post_ra>
// kernel: tpu_custom_call.1
= control target key start
LH: loop header
LB: loop body
LE: loop exit
PB: predicated region body
PF: predicated region fallthrough
CT: control target
= control target key end

     0   :  { %8 = vsyncpa [#allocation4], 0  ;;  %s420_s0 = inlined_call_operand.hbm [shape: f32[16,128], index: 0, kind: input, shape index: {}]   ;;  %s421_s1 = inlined_call_operand.hbm [shape: f32[128,128], index: 1, kind: input, shape index: {}]   ;;  %s422_s2 = inlined_call_operand.vmem [shape: f32[1,128], index: 2, kind: input, shape index: {}]   ;;  %s423_s3 = inlined_call_operand.hbm [shape: f32[16,128], index: 3, kind: output, shape index: {}]  }
   0x1   :  { %9 = vsyncpa [#allocation7], 0 }
   0x2   :  { %10 = vsyncpa [#allocation5], 0  ;;  %s347_s12 = smov [#allocation3]   ;;  %s275_s16 = scalar_lea.hbm %s420_s0, 256 }
   0x3   :  { %s16_s13 = sshll.u32 %s347_s12, 4  ;;  %p276_p0 = scmp.ne.s32.totalorder %s420_s0, %s275_s16  ;;  %s17_s13 = int_to_ptr.vmem [resolvable:$true] %s16_s13 }
   0x4   :  { %p279_p1 = scmp.lt.u32.totalorder %s275_s16, %s420_s0 }
   0x6   :  { %p281_p2 = pnand %p279_p1, %p276_p0 }
   0x8   :  { %284 = shalt.err (!%p281_p2)
}
   0x9   :  { %s285_s21 = scalar_lea.vmem %s17_s13, 256  ;;  %p290_p4 = scmp.lt.s32.totalorder %s17_s13, %s17_s13 }
   0xa   :  { %p286_p3 = scmp.ne.s32.totalorder %s17_s13, %s285_s21  ;;  %p291_p5 = scmp.lt.s32.totalorder %s285_s21, %s285_s21 }
   0xc   :  { %p292_p6 = por %p291_p5, %p290_p4 }
   0xe   :  { %p293_p7 = pnand %p292_p6, %p286_p3 }
  0x10   :  { %296 = shalt.err (!%p293_p7)
}
  0x11   :  { %s348_s22 = smov 128   ;;  %s349_s23 = smov 8  }
  0x12   :  { %22 = dma.hbm_to_vmem [thread:$0]  %s420_s0, 256, %s17_s13, [#allocation4], %s348_s22, %s348_s22, %s349_s23  }
  0x13   :  { %s350_s26 = smov [#allocation6]   ;;  %s297_s30 = scalar_lea.hbm %s421_s1, 2048 }
  0x14   :  { %s28_s27 = sshll.u32 %s350_s26, 4  ;;  %p298_p8 = scmp.ne.s32.totalorder %s421_s1, %s297_s30  ;;  %s29_s27 = int_to_ptr.vmem [resolvable:$true] %s28_s27 }
  0x15   :  { %p301_p9 = scmp.lt.u32.totalorder %s297_s30, %s421_s1 }
  0x17   :  { %p303_p10 = pnand %p301_p9, %p298_p8 }
  0x19   :  { %306 = shalt.err (!%p303_p10)
}
  0x1a   :  { %s307_s8 = scalar_lea.vmem %s29_s27, 2048  ;;  %p312_p12 = scmp.lt.s32.totalorder %s29_s27, %s29_s27 }
  0x1b   :  { %p308_p11 = scmp.ne.s32.totalorder %s29_s27, %s307_s8  ;;  %p313_p13 = scmp.lt.s32.totalorder %s307_s8, %s307_s8 }
  0x1d   :  { %p314_p0 = por %p313_p13, %p312_p12 }
  0x1f   :  { %p315_p1 = pnand %p314_p0, %p308_p11 }
  0x21   :  { %318 = shalt.err (!%p315_p1)
}
  0x22   :  { %34 = dma.hbm_to_vmem [thread:$0]  %s421_s1, 2048, %s29_s27, [#allocation7], %s348_s22, %s348_s22, %s349_s23  }
  0x23   :  { %341 = dma.done.wait [#allocation4], 256  }
  0x24   :  { %342 = vsyncadd [#allocation4], 4294967040 }
  0x25   :  { %343 = dma.done.wait [#allocation7], 2048  }
  0x26   :  { %344 = vsyncadd [#allocation7], 4294965248  ;;  %v53_v0 = vld [vmem:[#allocation6] sm:$0xff]  ;;  %v54_v1 = vld [vmem:[#allocation6 + $0x8] sm:$0xff]  ;;  %v158_v26 = vlaneseq  ;;  %s351_s11 = smov [#allocation8]  }
  0x27   :  { %v55_v2 = vld [vmem:[#allocation6 + $0x10] sm:$0xff]  ;;  %v238_v3 = vpack.c.bf16 %v54_v1, %v53_v0  ;;  %v56_v4 = vld [vmem:[#allocation6 + $0x18] sm:$0xff]  ;;  %v57_v7 = vld [vmem:[#allocation6 + $0x20] sm:$0xff]  ;;  %s172_s12 = sshll.u32 %s351_s11, 4  ;;  %s173_s12 = int_to_ptr.vmem [resolvable:$true] %s172_s12 }
  0x28   :  { %v242_v5 = vpack.c.bf16 %v56_v4, %v55_v2  ;;  %v51_v6 = vld [vmem:[#allocation3] sm:$0xff]  ;;  %v58_v8 = vld [vmem:[#allocation6 + $0x28] sm:$0xff]  ;;  %v60_v11 = vld [vmem:[#allocation6 + $0x38] sm:$0xff]  ;;  %v159_v27 = vshrl.u32 %v158_v26, 7  ;;  %s319_s13 = scalar_lea.vmem %s173_s12, 256  ;;  %p324_p3 = scmp.lt.s32.totalorder %s173_s12, %s173_s12 }
  0x29   :  { %239 = vmatprep.subr.bf16.mxu0 %v238_v3  ;;  %235 = vmatprep.mubr.f32.mxu0 %v51_v6  ;;  %v246_v9 = vpack.c.bf16 %v58_v8, %v57_v7  ;;  %v59_v10 = vld [vmem:[#allocation6 + $0x30] sm:$0xff]  ;;  %v61_v13 = vld [vmem:[#allocation6 + $0x40] sm:$0xff]  ;;  %v62_v14 = vld [vmem:[#allocation6 + $0x48] sm:$0xff]  ;;  %p320_p2 = scmp.ne.s32.totalorder %s173_s12, %s319_s13  ;;  %p325_p4 = scmp.lt.s32.totalorder %s319_s13, %s319_s13 }
  0x2a   :  { %241 = vmatpush3.bf16.xpose.msra.mxu0 %v238_v3  ;;  %v250_v12 = vpack.c.bf16 %v60_v11, %v59_v10  ;;  %v254_v15 = vpack.c.bf16 %v62_v14, %v61_v13  ;;  %v63_v16 = vld [vmem:[#allocation6 + $0x50] sm:$0xff]  ;;  %v64_v17 = vld [vmem:[#allocation6 + $0x58] sm:$0xff]  ;;  %v65_v19 = vld [vmem:[#allocation6 + $0x60] sm:$0xff]  ;;  %v160_v30 = vsub.s32 0, %v159_v27 }
  0x2b   :  { %243 = vmatprep.subr.bf16.mxu0 %v242_v5  ;;  %v258_v18 = vpack.c.bf16 %v64_v17, %v63_v16  ;;  %v66_v20 = vld [vmem:[#allocation6 + $0x68] sm:$0xff]  ;;  %v67_v22 = vld [vmem:[#allocation6 + $0x70] sm:$0xff]  ;;  %v68_v23 = vld [vmem:[#allocation6 + $0x78] sm:$0xff]  ;;  %p326_p5 = por %p325_p4, %p324_p3 }
  0x2c   :  { %v262_v21 = vpack.c.bf16 %v66_v20, %v65_v19  ;;  %v266_v24 = vpack.c.bf16 %v68_v23, %v67_v22  ;;  %v52_v25 = vld [vmem:[#allocation3 + $0x8] sm:$0xff]  ;;  %v155_v28 = vld [vmem:[%s422_s2] sm:$0x1] }
  0x2d   :  { %v156_v29 = vmul.f32 1.4142135, %v155_v28  ;;  %p327_p6 = pnand %p326_p5, %p320_p2 }
  0x2f   :  { %v161_v31 = vrot.slane %v156_v29, %v160_v30 }
  0x32   :  { %245 = vmatpush3.bf16.xpose.msra.mxu0 %v242_v5 }
  0x33   :  { %247 = vmatprep.subr.bf16.mxu0 %v246_v9 }
  0x3a   :  { %249 = vmatpush3.bf16.xpose.msra.mxu0 %v246_v9 }
  0x3b   :  { %251 = vmatprep.subr.bf16.mxu0 %v250_v12 }
  0x42   :  { %253 = vmatpush3.bf16.xpose.msra.mxu0 %v250_v12 }
  0x43   :  { %255 = vmatprep.subr.bf16.mxu0 %v254_v15 }
  0x4a   :  { %257 = vmatpush3.bf16.xpose.msra.mxu0 %v254_v15 }
  0x4b   :  { %259 = vmatprep.subr.bf16.mxu0 %v258_v18 }
  0x52   :  { %261 = vmatpush3.bf16.xpose.msra.mxu0 %v258_v18 }
  0x53   :  { %263 = vmatprep.subr.bf16.mxu0 %v262_v21 }
  0x5a   :  { %265 = vmatpush3.bf16.xpose.msra.mxu0 %v262_v21 }
  0x5b   :  { %267 = vmatprep.subr.bf16.mxu0 %v266_v24 }
  0x62   :  { %269 = vmatpush3.bf16.xpose.msra.mxu0 %v266_v24 }
  0x69   :  { %236 = vmatmul.mubr.f32.vlgmr.msra.gmra.mrb[0].mxu0 %v52_v25 }
 0x13c   :  { %v237_v32 = vpop.f32.mrb[0].mxu0 }
 0x13d   :  { %v154_v33 = vmul.f32 0.35355338, %v237_v32  ;;  %v135_v34 = vpop.f32.mrb[1].mxu0 }
 0x13e   :  { %v153_v35 = vmul.f32 0.35355338, %v135_v34 }
 0x13f   :  { %v164_v36 = vadd.f32 %v161_v31, %v154_v33 }
 0x140   :  { %v163_v37 = vadd.f32 %v161_v31, %v153_v35 }
 0x141   :  { %166 = vst [vmem:[#allocation8 + $0x8] sm:$0xff] %v164_v36 }
 0x142   :  { %165 = vst [vmem:[#allocation8] sm:$0xff] %v163_v37 }
 0x143   :  { %330 = shalt.err (!%p327_p6)
}
 0x144   :  { %s331_s15 = scalar_lea.hbm %s423_s3, 256 }
 0x145   :  { %p332_p7 = scmp.ne.s32.totalorder %s423_s3, %s331_s15  ;;  %p335_p8 = scmp.lt.u32.totalorder %s331_s15, %s423_s3 }
 0x147   :  { %p337_p9 = pnand %p335_p8, %p332_p7 }
 0x149   :  { %340 = shalt.err (!%p337_p9)
}
 0x14a   :  { %178 = dma.vmem_to_hbm [thread:$0]  %s173_s12, 256, %s423_s3, [#allocation5], %s348_s22, %s348_s22, %s349_s23  }
 0x14b   :  { %345 = dma.done.wait [#allocation5], 256  }
 0x14c   :  { %346 = vsyncadd [#allocation5], 4294967040 }
 0x14d   :  { %182 = vsyncpa [#allocation4], 1 }
 0x14e   :  { %183 = vsyncpa [#allocation7], 1 }
 0x14f   :  { %184 = vsyncpa [#allocation5], 1 }

</bundles_post_ra>
